<compile_context>
chip_gen: v6e
topology: v6e:2x2x1
jax: 0.10.0
libtpu: 0.0.40
codegen_flags: <defaults>
</compile_context>

<pallas_src>
import functools

import jax
import jax.numpy as jnp
from jax import lax
from jax.experimental import pallas as pl
from jax.experimental.pallas import tpu as pltpu


def _tensorcores_per_chip():
    """Best-effort TensorCore count one Pallas program can span (fails safe to 1)."""
    try:
        kind = jax.devices()[0].device_kind.lower()
    except Exception:
        return 1
    if any(tag in kind for tag in ("lite", "v5e", "v6e", "v2", "v3")):
        return 1  # one TensorCore per addressable device
    if any(tag in kind for tag in ("v4", "v5p", "v7", "7x")):
        return 2  # megacore (v4/v5p) or v7x: two TensorCores per chip
    return 1


def _mse_partial_kernel(o_ref, t_ref, out_ref, *, tr, cols, rows_total,
                        tiles_per_split, fold, need_mask):
    """Accumulate per-split partial sums of squared error into out_ref.

    Grid: (splits, tiles_per_split).  Axis 0 is 'parallel' (megacore/v7x
    sharding); axis 1 is the streaming reduction axis.  The output block's
    index depends only on axis 0, so it stays resident in VMEM and doubles as
    the accumulator.
    """
    s = pl.program_id(0)
    i = pl.program_id(1)

    @pl.when(i == 0)
    def _init():
        out_ref[...] = jnp.zeros_like(out_ref)

    d = o_ref[...].astype(jnp.float32) - t_ref[...].astype(jnp.float32)
    sq = d * d

    if need_mask:
        # Rows whose global index >= rows_total hold stale data from a partial
        # (or clamped, fully out-of-range) boundary block: zero them out.
        limit = rows_total - (s * tiles_per_split + i) * tr
        row_ids = lax.broadcasted_iota(jnp.int32, (tr, cols), 0)
        sq = jnp.where(row_ids < limit, sq, 0.0)

    if fold:
        # (tr, C) -> (tr//8, 8, C) is a free, sublane-aligned view; the sum
        # over axis 0 is a pure-VPU tree of whole-vreg adds, so the resident
        # accumulator is only (8, C) instead of a full block.
        sq = sq.reshape(tr // 8, 8, cols).sum(axis=0)

    out_ref[...] += sq


@functools.partial(jax.jit,
                   static_argnames=("block_bytes", "num_splits", "buffers"))
def energy_predictor_loss(outputs, targets, *, block_bytes=2 * 1024 * 1024,
                          num_splits=None, buffers=2):
    """MSE loss (mean reduction), matching torch.nn.MSELoss()(outputs, targets)."""
    assert outputs.shape == targets.shape
    n = int(outputs.size)  # static under jit
    if n == 0:
        return jnp.full((), jnp.nan, jnp.float32)

    # ---- zero-copy 2-D view -------------------------------------------------
    R = C = None
    for lanes in (1024, 512, 256, 128):
        if n % lanes == 0:
            R, C = n // lanes, lanes        # lane-dense slab, free reshape
            break
    if R is None:
        if outputs.ndim >= 2:
            C = int(outputs.shape[-1])      # full-extent lane dim, free reshape
            R = n // C
        else:
            R, C = 1, n
    o2 = outputs.reshape(R, C)
    t2 = targets.reshape(R, C)

    # ---- block sizing (in bytes, dtype aware) --------------------------------
    itemsize = int(jnp.dtype(outputs.dtype).itemsize)
    sub = max(8, 32 // max(itemsize, 1))    # 8 rows for f32, 16 for bf16, 32 for int8
    rows_per_block = max(sub, (block_bytes // (C * itemsize)) // sub * sub)

    if R <= rows_per_block and (R % 8 == 0 or R <= 64):
        tr = R                              # one full-height block (any R is legal)
    else:
        tr = min(rows_per_block, max(sub, (R // sub) * sub))
    tiles_total = pl.cdiv(R, tr)

    fold = (tr % 8 == 0) and tr >= 8
    out_rows = 8 if fold else tr

    # ---- split the reduction across TensorCores ------------------------------
    if num_splits is None:
        num_splits = _tensorcores_per_chip()
    splits = max(1, min(int(num_splits), tiles_total))
    tiles_per_split = pl.cdiv(tiles_total, splits)
    need_clamp = splits * tiles_per_split > tiles_total
    need_mask = splits * tiles_per_split * tr != R

    last_block = tiles_total - 1
    if need_clamp:
        def in_map(s, i):
            # Fully out-of-range logical blocks re-read the last real block
            # (a bounded, in-range DMA); the in-kernel row mask zeroes them.
            return (jnp.minimum(s * tiles_per_split + i, last_block), 0)
    else:
        def in_map(s, i):
            return (s * tiles_per_split + i, 0)

    spec_kwargs = {}
    if buffers != 2:   # e.g. buffers=3 on v7x if the profile shows exposed DMA gaps
        spec_kwargs["pipeline_mode"] = pl.Buffered(buffers)

    kernel = functools.partial(
        _mse_partial_kernel, tr=tr, cols=C, rows_total=R,
        tiles_per_split=tiles_per_split, fold=fold, need_mask=need_mask)

    bytes_accessed = (R * C * (o2.dtype.itemsize + t2.dtype.itemsize)
                      + splits * out_rows * C * 4)

    partials = pl.pallas_call(
        kernel,
        out_shape=jax.ShapeDtypeStruct((splits * out_rows, C), jnp.float32),
        grid_spec=pltpu.PrefetchScalarGridSpec(
            num_scalar_prefetch=0,
            grid=(splits, tiles_per_split),
            in_specs=[pl.BlockSpec((tr, C), in_map, **spec_kwargs),
                      pl.BlockSpec((tr, C), in_map, **spec_kwargs)],
            out_specs=pl.BlockSpec((out_rows, C), lambda s, i: (s, 0)),
        ),
        compiler_params=pltpu.CompilerParams(
            dimension_semantics=("parallel", "arbitrary"),
            # 2 inputs x `buffers` x block + the small output block; 32 MiB is
            # ample headroom and within every generation's physical VMEM.
            vmem_limit_bytes=int(max(32 * 1024 * 1024,
                                     2 * buffers * tr * C * itemsize + (8 << 20))),
        ),
        cost_estimate=pl.CostEstimate(
            flops=3 * R * C,
            transcendentals=0,
            bytes_accessed=int(bytes_accessed),
        ),
    )(o2, t2)

    # Tiny finalize on the XLA side; mean over the ORIGINAL element count.
    return jnp.sum(partials) / jnp.float32(n)


if __name__ == "__main__":
    key = jax.random.PRNGKey(0)
    k1, k2, k3, k4, k5, k6 = jax.random.split(key, 6)

    def check(o, t, **kw):
        loss = jax.block_until_ready(energy_predictor_loss(o, t, **kw))
        ref = jnp.mean((o.astype(jnp.float32) - t.astype(jnp.float32)) ** 2)
        assert jnp.allclose(loss, ref, rtol=1e-5, atol=1e-6), (kw, loss, ref)

    # (B, T) consistent with the module's forward.
    B, T = 8, 256
    check(jax.random.normal(k1, (B, T), jnp.float32),
          jnp.abs(jax.random.normal(k2, (B, T), jnp.float32)) * 3.0)

    # Non-tile-aligned (B, T): exercises the pad-free ragged layout path.
    check(jax.random.normal(k3, (3, 173), jnp.float32),
          jnp.abs(jax.random.normal(k4, (3, 173), jnp.float32)) * 2.0)

    # Force the streaming path at a small shape: multi-tile grid, partial last
    # block (row mask), odd tile count + 2 splits (clamped index map).
    check(jax.random.normal(k5, (49, 173), jnp.float32),
          jax.random.normal(k6, (49, 173), jnp.float32),
          block_bytes=8 * 173 * 4, num_splits=2)

    # Lane-dense slab path with an even 2-way split and a masked ragged tail.
    check(jax.random.normal(k1, (16, 1000), jnp.float32),
          jax.random.normal(k2, (16, 1000), jnp.float32),
          block_bytes=16 * 1024, num_splits=2)

    print("KERNEL_OK")
</pallas_src>

<mosaic_0001>
module attributes {stable_mosaic.version = 11 : i64} {
  func.func @_mse_partial_kernel(%arg0: i32, %arg1: i32, %arg2: memref<2x1024xf32, #tpu.memory_space<vmem>>, %arg3: memref<2x1024xf32, #tpu.memory_space<vmem>>, %arg4: memref<2x1024xf32, #tpu.memory_space<vmem>>) attributes {dimension_semantics = [#tpu.dimension_semantics<parallel>, #tpu.dimension_semantics<arbitrary>], iteration_bounds = array<i64: 1, 1>, scalar_prefetch = 0 : i64, scratch_operands = 0 : i64, tpu.core_type = #tpu.core_type<tc>, window_params = [{transform_indices = @transform_0, window_bounds = array<i64: 2, 1024>}, {transform_indices = @transform_1, window_bounds = array<i64: 2, 1024>}, {transform_indices = @transform_2, window_bounds = array<i64: 2, 1024>}]} {
    %c0_i32 = arith.constant 0 : i32
    %0 = arith.cmpi eq, %arg1, %c0_i32 : i32
    %1 = arith.extui %0 : i1 to i32
    %c0_i32_0 = arith.constant 0 : i32
    %2 = arith.cmpi ne, %1, %c0_i32_0 : i32
    scf.if %2 {
      %cst = arith.constant 0.000000e+00 : f32
      %10 = vector.broadcast %cst : f32 to vector<2x1024xf32>
      %c0_8 = arith.constant 0 : index
      %c0_9 = arith.constant 0 : index
      %11 = vector.load %arg4[%c0_8, %c0_9] : memref<2x1024xf32, #tpu.memory_space<vmem>>, vector<2x1024xf32>
      tpu.vector_store %arg4[%c0_8, %c0_9], %10 {strides = array<i32>} : memref<2x1024xf32, #tpu.memory_space<vmem>>, vector<2x1024xf32>,
    } else {
    }
    %c0 = arith.constant 0 : index
    %c0_1 = arith.constant 0 : index
    %3 = vector.load %arg2[%c0, %c0_1] : memref<2x1024xf32, #tpu.memory_space<vmem>>, vector<2x1024xf32>
    %c0_2 = arith.constant 0 : index
    %c0_3 = arith.constant 0 : index
    %4 = vector.load %arg3[%c0_2, %c0_3] : memref<2x1024xf32, #tpu.memory_space<vmem>>, vector<2x1024xf32>
    %5 = arith.subf %3, %4 : vector<2x1024xf32>
    %6 = arith.mulf %5, %5 : vector<2x1024xf32>
    %c0_4 = arith.constant 0 : index
    %c0_5 = arith.constant 0 : index
    %7 = vector.load %arg4[%c0_4, %c0_5] : memref<2x1024xf32, #tpu.memory_space<vmem>>, vector<2x1024xf32>
    %8 = arith.addf %7, %6 : vector<2x1024xf32>
    %c0_6 = arith.constant 0 : index
    %c0_7 = arith.constant 0 : index
    %9 = vector.load %arg4[%c0_6, %c0_7] : memref<2x1024xf32, #tpu.memory_space<vmem>>, vector<2x1024xf32>
    tpu.vector_store %arg4[%c0_6, %c0_7], %8 {strides = array<i32>} : memref<2x1024xf32, #tpu.memory_space<vmem>>, vector<2x1024xf32>,
    return
  }
  func.func @transform_0(%arg0: i32, %arg1: i32) -> (i32, i32) {
    %c1_i32 = arith.constant 1 : i32
    %0 = arith.muli %arg0, %c1_i32 : i32
    %1 = arith.addi %0, %arg1 : i32
    %c0_i32 = arith.constant 0 : i32
    %c0_i32_0 = arith.constant 0 : i32
    return %1, %c0_i32 : i32, i32
  }
  func.func @transform_1(%arg0: i32, %arg1: i32) -> (i32, i32) {
    %c1_i32 = arith.constant 1 : i32
    %0 = arith.muli %arg0, %c1_i32 : i32
    %1 = arith.addi %0, %arg1 : i32
    %c0_i32 = arith.constant 0 : i32
    %c0_i32_0 = arith.constant 0 : i32
    return %1, %c0_i32 : i32, i32
  }
  func.func @transform_2(%arg0: i32, %arg1: i32) -> (i32, i32) {
    %c0_i32 = arith.constant 0 : i32
    %c0_i32_0 = arith.constant 0 : i32
    return %arg0, %c0_i32 : i32, i32
  }
}

</mosaic_0001>

<bundles_post_ra>
// kernel: energy_predictor_loss.1
= control target key start
LH: loop header
LB: loop body
LE: loop exit
PB: predicated region body
PF: predicated region fallthrough
CT: control target
= control target key end

     0   :  { %s121_s0 = inlined_call_operand.vmem [shape: f32[2,1024], index: 0, kind: input, shape index: {}]   ;;  %s122_s1 = inlined_call_operand.vmem [shape: f32[2,1024], index: 1, kind: input, shape index: {}]   ;;  %s123_s2 = inlined_call_operand.vmem [shape: f32[2,1024], index: 2, kind: output, shape index: {}]  }
   0x1   :  { %v57_v0 = vld [vmem:[%s121_s0] sm:$0xff]  ;;  %v58_v2 = vld [vmem:[%s121_s0 + $0x8] sm:$0xff] }
   0x2   :  { %v59_v1 = vld [vmem:[%s122_s1] sm:$0xff]  ;;  %v60_v4 = vld [vmem:[%s122_s1 + $0x8] sm:$0xff] }
   0x3   :  { %v61_v3 = vsub.f32 %v57_v0, %v59_v1  ;;  %v62_v5 = vsub.f32 %v58_v2, %v60_v4 }
   0x5   :  { %v63_v6 = vmul.f32 %v61_v3, %v61_v3  ;;  %v64_v7 = vmul.f32 %v62_v5, %v62_v5 }
   0x7   :  { %69 = vst [vmem:[%s123_s2] sm:$0xff] %v63_v6  ;;  %70 = vst [vmem:[%s123_s2 + $0x8] sm:$0xff] %v64_v7 }

</bundles_post_ra>
